<compile_context>
chip_gen: v7x
topology: tpu7x:2x2x1
jax: 0.10.0
libtpu: 0.0.40
codegen_flags: <defaults>
</compile_context>

<pallas_src>
import functools

import jax
import jax.numpy as jnp
from jax.experimental import pallas as pl
from jax.experimental.pallas import tpu as pltpu


def _mha_kernel(x_ref, wq_ref, wk_ref, wv_ref, wo_ref, o_ref, *,
                d_model, q_tile, num_q_tiles, group_size, head_dim):
    # x_ref:   (1, S, D)        bf16   (per-batch, reused across q tiles / head groups)
    # wq/wk/wv:(HG, D, G*Dh)    bf16   (full weight, resident; sliced by head group)
    # wo_ref:  (HG, G*Dh, D)    bf16
    # o_ref:   (1, Tq, D)       f32    (resident across the head-group axis)
    qt = pl.program_id(1)
    hg = pl.program_id(2)

    x = x_ref[0]                     # (S, D) bf16
    wq = wq_ref[hg]                  # (D, G*Dh) bf16
    wk = wk_ref[hg]
    wv = wv_ref[hg]
    wo = wo_ref[hg]                  # (G*Dh, D) bf16

    # K/V over the full sequence for this head group (MXU, f32 accumulate).
    k = jnp.dot(x, wk, preferred_element_type=jnp.float32)     # (S, G*Dh)
    v = jnp.dot(x, wv, preferred_element_type=jnp.float32)     # (S, G*Dh)

    # Q only for this query tile.
    if num_q_tiles == 1:
        xq = x
    else:
        xq = jax.lax.dynamic_slice_in_dim(x, qt * q_tile, q_tile, axis=0)
    q = jnp.dot(xq, wq, preferred_element_type=jnp.float32)    # (Tq, G*Dh)

    # Reference uses 1/sqrt(d_model) (NOT head_dim); fold into q (cheap, Tq*G*Dh).
    scale = 1.0 / (float(d_model) ** 0.5)
    qb = (q * scale).astype(jnp.bfloat16)
    kb = k.astype(jnp.bfloat16)
    vb = v.astype(jnp.bfloat16)

    # Per-head attention inside the group (static unroll, G is small).
    heads = []
    for g in range(group_size):
        sl = slice(g * head_dim, (g + 1) * head_dim)
        # QK^T without an explicit transpose: contract both on their last axis.
        logits = jax.lax.dot_general(
            qb[:, sl], kb[:, sl],
            dimension_numbers=(((1,), (1,)), ((), ())),
            preferred_element_type=jnp.float32)                 # (Tq, S) f32
        m = jnp.max(logits, axis=-1, keepdims=True)
        p = jnp.exp(logits - m)                                 # (Tq, S) f32
        denom = jnp.sum(p, axis=-1, keepdims=True)              # (Tq, 1)  f32
        # Deferred normalization: PV first (bf16 MXU), then scale the small
        # (Tq, Dh) result by the EUP reciprocal.
        pv = jnp.dot(p.astype(jnp.bfloat16), vb[:, sl],
                     preferred_element_type=jnp.float32)        # (Tq, Dh)
        heads.append(pv * pl.reciprocal(denom, approx=True))

    # combine_heads followed by W_o distributes over head groups:
    #   out = sum_hg O_hg @ W_o[hg*G*Dh:(hg+1)*G*Dh, :]
    o_grp = jnp.concatenate(heads, axis=-1).astype(jnp.bfloat16)     # (Tq, G*Dh)
    contrib = jnp.dot(o_grp, wo, preferred_element_type=jnp.float32)  # (Tq, D)

    @pl.when(hg == 0)
    def _():
        o_ref[0] = contrib.astype(o_ref.dtype)

    @pl.when(hg != 0)
    def _():
        o_ref[0] += contrib.astype(o_ref.dtype)


def _choose_q_tile(S):
    if S <= 1024:
        return S
    for t in (1024, 512, 256, 128, 64, 32, 16, 8):
        if S % t == 0:
            return t
    return S


def _choose_head_group(num_heads, head_dim):
    # Aim for G*Dh >= 256 (v6e/v7x MXU width; also covers v5e's 128), G | H.
    target = min(num_heads, max(1, -(-256 // head_dim)))
    for g in range(target, 0, -1):
        if num_heads % g == 0:
            return g
    return 1


def _vmem_limit_bytes():
    try:
        info = pltpu.get_tpu_info()
        cap = int(getattr(info, "vmem_capacity_bytes", 64 * 1024 * 1024))
    except Exception:
        cap = 64 * 1024 * 1024
    # ~75% of physical (v7x: ~48 MiB of 64; v5e/v6e: 96 MiB of 128), capped.
    return int(max(32 * 1024 * 1024, min(int(cap * 0.75), 100 * 1024 * 1024)))


def multi_head_attention(x, w_q, w_k, w_v, w_o, *, num_heads):
    """x: (B, S, D) f32.  w_*: (D, D) f32, stored (in, out) = W.T of nn.Linear."""
    B, S, D = x.shape
    assert D % num_heads == 0, "d_model must divide num_heads"
    Dh = D // num_heads

    G = _choose_head_group(num_heads, Dh)       # heads per grid step
    HG = num_heads // G                         # head groups (reduction axis)
    GDh = G * Dh

    Tq = _choose_q_tile(S)                      # query tile
    NQT = S // Tq

    cdt = jnp.bfloat16
    xb = x.astype(cdt)
    # Group-sliced weight slabs (computed once on the XLA side, negligible).
    wq_g = w_q.reshape(D, HG, GDh).transpose(1, 0, 2).astype(cdt)   # (HG, D, GDh)
    wk_g = w_k.reshape(D, HG, GDh).transpose(1, 0, 2).astype(cdt)
    wv_g = w_v.reshape(D, HG, GDh).transpose(1, 0, 2).astype(cdt)
    wo_g = w_o.reshape(HG, GDh, D).astype(cdt)                      # (HG, GDh, D)

    kernel = functools.partial(
        _mha_kernel, d_model=D, q_tile=Tq, num_q_tiles=NQT,
        group_size=G, head_dim=Dh)

    flops = 8 * B * S * D * D + 4 * B * S * S * D
    transcendentals = B * num_heads * S * S
    bytes_accessed = (B * NQT * HG * S * D * 2   # x re-read per grid step
                      + 4 * D * D * 2            # resident weights (bf16)
                      + B * S * D * 4)           # f32 output
    cost = pl.CostEstimate(flops=flops,
                           transcendentals=transcendentals,
                           bytes_accessed=bytes_accessed)

    w_qkv_spec = pl.BlockSpec((HG, D, GDh), lambda b, qt, hg: (0, 0, 0))

    return pl.pallas_call(
        kernel,
        out_shape=jax.ShapeDtypeStruct((B, S, D), x.dtype),
        grid_spec=pltpu.PrefetchScalarGridSpec(
            num_scalar_prefetch=0,
            grid=(B, NQT, HG),                   # head-group (reduction) axis innermost
            in_specs=[
                pl.BlockSpec((1, S, D), lambda b, qt, hg: (b, 0, 0)),    # x
                w_qkv_spec,                                              # W_q (resident)
                w_qkv_spec,                                              # W_k (resident)
                w_qkv_spec,                                              # W_v (resident)
                pl.BlockSpec((HG, GDh, D), lambda b, qt, hg: (0, 0, 0)), # W_o (resident)
            ],
            out_specs=pl.BlockSpec((1, Tq, D), lambda b, qt, hg: (b, qt, 0)),
        ),
        compiler_params=pltpu.CompilerParams(
            dimension_semantics=("parallel", "parallel", "arbitrary"),
            vmem_limit_bytes=_vmem_limit_bytes()),
        cost_estimate=cost,
    )(xb, wq_g, wk_g, wv_g, wo_g)


def _reference_mha(x, w_q, w_k, w_v, w_o, *, num_heads):
    """Pure-JAX f32 reference mirroring the PyTorch forward exactly."""
    B, S, D = x.shape
    Dh = D // num_heads

    def split(t):  # (B,S,D) -> (B,H,S,Dh)
        return t.reshape(B, S, num_heads, Dh).transpose(0, 2, 1, 3)

    q = split(x @ w_q)
    k = split(x @ w_k)
    v = split(x @ w_v)
    logits = jnp.einsum("bhqd,bhkd->bhqk", q, k) / jnp.sqrt(jnp.float32(D))
    att = jax.nn.softmax(logits, axis=-1)
    out = jnp.einsum("bhqk,bhkd->bhqd", att, v)
    out = out.transpose(0, 2, 1, 3).reshape(B, S, D)
    return out @ w_o


if __name__ == "__main__":
    # Small shapes consistent with the module.
    B, S, D, H = 2, 8, 32, 4

    key = jax.random.PRNGKey(0)
    kx, kq, kk, kv, ko = jax.random.split(key, 5)

    x = jax.random.normal(kx, (B, S, D), dtype=jnp.float32)

    # Deterministic Linear-style init: U(-1/sqrt(D), 1/sqrt(D)), stored (in, out).
    bound = 1.0 / (D ** 0.5)
    w_q = jax.random.uniform(kq, (D, D), jnp.float32, -bound, bound)
    w_k = jax.random.uniform(kk, (D, D), jnp.float32, -bound, bound)
    w_v = jax.random.uniform(kv, (D, D), jnp.float32, -bound, bound)
    w_o = jax.random.uniform(ko, (D, D), jnp.float32, -bound, bound)

    out = multi_head_attention(x, w_q, w_k, w_v, w_o, num_heads=H)
    out = jax.block_until_ready(out)

    ref = _reference_mha(x, w_q, w_k, w_v, w_o, num_heads=H)
    assert out.shape == (B, S, D)
    # Kernel runs MXU matmuls in bf16 (f32 accumulate) with an approx EUP
    # reciprocal in the softmax; reference is pure f32 -> bf16-level tolerance.
    assert jnp.allclose(out, ref, atol=3e-2, rtol=3e-2), "mismatch vs reference"

    print("KERNEL_OK")
</pallas_src>

<mosaic_0001>
module attributes {stable_mosaic.version = 11 : i64} {
  func.func @_mha_kernel(%arg0: i32, %arg1: i32, %arg2: i32, %arg3: memref<1x8x32xbf16, #tpu.memory_space<vmem>>, %arg4: memref<1x32x32xbf16, #tpu.memory_space<vmem>>, %arg5: memref<1x32x32xbf16, #tpu.memory_space<vmem>>, %arg6: memref<1x32x32xbf16, #tpu.memory_space<vmem>>, %arg7: memref<1x32x32xbf16, #tpu.memory_space<vmem>>, %arg8: memref<1x8x32xf32, #tpu.memory_space<vmem>>) attributes {dimension_semantics = [#tpu.dimension_semantics<parallel>, #tpu.dimension_semantics<parallel>, #tpu.dimension_semantics<arbitrary>], iteration_bounds = array<i64: 2, 1, 1>, scalar_prefetch = 0 : i64, scratch_operands = 0 : i64, tpu.core_type = #tpu.core_type<tc>, window_params = [{transform_indices = @transform_0, window_bounds = array<i64: 1, 8, 32>}, {pipeline_mode = #tpu.pipeline_mode<synchronous>, transform_indices = @transform_1, window_bounds = array<i64: 1, 32, 32>}, {pipeline_mode = #tpu.pipeline_mode<synchronous>, transform_indices = @transform_2, window_bounds = array<i64: 1, 32, 32>}, {pipeline_mode = #tpu.pipeline_mode<synchronous>, transform_indices = @transform_3, window_bounds = array<i64: 1, 32, 32>}, {pipeline_mode = #tpu.pipeline_mode<synchronous>, transform_indices = @transform_4, window_bounds = array<i64: 1, 32, 32>}, {transform_indices = @transform_5, window_bounds = array<i64: 1, 8, 32>}]} {
    %c0 = arith.constant 0 : index
    %c0_0 = arith.constant 0 : index
    %c0_1 = arith.constant 0 : index
    %0 = vector.load %arg3[%c0, %c0_0, %c0_1] : memref<1x8x32xbf16, #tpu.memory_space<vmem>>, vector<1x8x32xbf16>
    %1 = vector.shape_cast %0 : vector<1x8x32xbf16> to vector<8x32xbf16>
    %2 = arith.index_cast %arg2 : i32 to index
    %c0_2 = arith.constant 0 : index
    %c0_3 = arith.constant 0 : index
    %3 = vector.load %arg4[%2, %c0_2, %c0_3] : memref<1x32x32xbf16, #tpu.memory_space<vmem>>, vector<1x32x32xbf16>
    %4 = vector.shape_cast %3 : vector<1x32x32xbf16> to vector<32x32xbf16>
    %5 = arith.index_cast %arg2 : i32 to index
    %c0_4 = arith.constant 0 : index
    %c0_5 = arith.constant 0 : index
    %6 = vector.load %arg5[%5, %c0_4, %c0_5] : memref<1x32x32xbf16, #tpu.memory_space<vmem>>, vector<1x32x32xbf16>
    %7 = vector.shape_cast %6 : vector<1x32x32xbf16> to vector<32x32xbf16>
    %8 = arith.index_cast %arg2 : i32 to index
    %c0_6 = arith.constant 0 : index
    %c0_7 = arith.constant 0 : index
    %9 = vector.load %arg6[%8, %c0_6, %c0_7] : memref<1x32x32xbf16, #tpu.memory_space<vmem>>, vector<1x32x32xbf16>
    %10 = vector.shape_cast %9 : vector<1x32x32xbf16> to vector<32x32xbf16>
    %11 = arith.index_cast %arg2 : i32 to index
    %c0_8 = arith.constant 0 : index
    %c0_9 = arith.constant 0 : index
    %12 = vector.load %arg7[%11, %c0_8, %c0_9] : memref<1x32x32xbf16, #tpu.memory_space<vmem>>, vector<1x32x32xbf16>
    %13 = vector.shape_cast %12 : vector<1x32x32xbf16> to vector<32x32xbf16>
    %cst = arith.constant dense<0.000000e+00> : vector<8x32xf32>
    %14 = tpu.matmul %1, %7, %cst {dimension_numbers = #tpu.dot_dimension_numbers<[1], [0], [0], [1], [0, 0, 1, 1], [], []>} : vector<8x32xbf16>, vector<32x32xbf16>, vector<8x32xf32> -> vector<8x32xf32>
    %cst_10 = arith.constant dense<0.000000e+00> : vector<8x32xf32>
    %15 = tpu.matmul %1, %10, %cst_10 {dimension_numbers = #tpu.dot_dimension_numbers<[1], [0], [0], [1], [0, 0, 1, 1], [], []>} : vector<8x32xbf16>, vector<32x32xbf16>, vector<8x32xf32> -> vector<8x32xf32>
    %cst_11 = arith.constant dense<0.000000e+00> : vector<8x32xf32>
    %16 = tpu.matmul %1, %4, %cst_11 {dimension_numbers = #tpu.dot_dimension_numbers<[1], [0], [0], [1], [0, 0, 1, 1], [], []>} : vector<8x32xbf16>, vector<32x32xbf16>, vector<8x32xf32> -> vector<8x32xf32>
    %cst_12 = arith.constant 0.176776692 : f32
    %17 = vector.broadcast %cst_12 : f32 to vector<8x32xf32>
    %18 = arith.mulf %16, %17 : vector<8x32xf32>
    %19 = arith.truncf %18 : vector<8x32xf32> to vector<8x32xbf16>
    %20 = arith.truncf %14 : vector<8x32xf32> to vector<8x32xbf16>
    %21 = arith.truncf %15 : vector<8x32xf32> to vector<8x32xbf16>
    %22 = vector.extract_strided_slice %19 {offsets = [0, 0], sizes = [8, 8], strides = [1, 1]} : vector<8x32xbf16> to vector<8x8xbf16>
    %23 = vector.extract_strided_slice %20 {offsets = [0, 0], sizes = [8, 8], strides = [1, 1]} : vector<8x32xbf16> to vector<8x8xbf16>
    %cst_13 = arith.constant dense<0.000000e+00> : vector<8x8xf32>
    %24 = tpu.matmul %22, %23, %cst_13 {dimension_numbers = #tpu.dot_dimension_numbers<[1], [1], [0], [0], [0, 0, 1, 0], [], []>} : vector<8x8xbf16>, vector<8x8xbf16>, vector<8x8xf32> -> vector<8x8xf32>
    %cst_14 = arith.constant dense<0xFF800000> : vector<8xf32>
    %25 = vector.multi_reduction <maximumf>, %24, %cst_14 [1] : vector<8x8xf32> to vector<8xf32>
    %26 = vector.shape_cast %25 : vector<8xf32> to vector<8x1xf32>
    %27 = vector.broadcast %26 : vector<8x1xf32> to vector<8x8xf32>
    %28 = arith.subf %24, %27 : vector<8x8xf32>
    %29 = math.exp %28 : vector<8x8xf32>
    %cst_15 = arith.constant dense<0.000000e+00> : vector<8xf32>
    %30 = vector.multi_reduction <add>, %29, %cst_15 [1] : vector<8x8xf32> to vector<8xf32>
    %31 = vector.shape_cast %30 : vector<8xf32> to vector<8x1xf32>
    %32 = arith.truncf %29 : vector<8x8xf32> to vector<8x8xbf16>
    %33 = vector.extract_strided_slice %21 {offsets = [0, 0], sizes = [8, 8], strides = [1, 1]} : vector<8x32xbf16> to vector<8x8xbf16>
    %cst_16 = arith.constant dense<0.000000e+00> : vector<8x8xf32>
    %34 = tpu.matmul %32, %33, %cst_16 {dimension_numbers = #tpu.dot_dimension_numbers<[1], [0], [0], [1], [0, 0, 1, 1], [], []>} : vector<8x8xbf16>, vector<8x8xbf16>, vector<8x8xf32> -> vector<8x8xf32>
    %35 = tpu.reciprocal %31 {approx = true} : vector<8x1xf32> -> vector<8x1xf32>
    %36 = vector.broadcast %35 : vector<8x1xf32> to vector<8x8xf32>
    %37 = arith.mulf %34, %36 : vector<8x8xf32>
    %38 = vector.extract_strided_slice %19 {offsets = [0, 8], sizes = [8, 8], strides = [1, 1]} : vector<8x32xbf16> to vector<8x8xbf16>
    %39 = vector.extract_strided_slice %20 {offsets = [0, 8], sizes = [8, 8], strides = [1, 1]} : vector<8x32xbf16> to vector<8x8xbf16>
    %cst_17 = arith.constant dense<0.000000e+00> : vector<8x8xf32>
    %40 = tpu.matmul %38, %39, %cst_17 {dimension_numbers = #tpu.dot_dimension_numbers<[1], [1], [0], [0], [0, 0, 1, 0], [], []>} : vector<8x8xbf16>, vector<8x8xbf16>, vector<8x8xf32> -> vector<8x8xf32>
    %cst_18 = arith.constant dense<0xFF800000> : vector<8xf32>
    %41 = vector.multi_reduction <maximumf>, %40, %cst_18 [1] : vector<8x8xf32> to vector<8xf32>
    %42 = vector.shape_cast %41 : vector<8xf32> to vector<8x1xf32>
    %43 = vector.broadcast %42 : vector<8x1xf32> to vector<8x8xf32>
    %44 = arith.subf %40, %43 : vector<8x8xf32>
    %45 = math.exp %44 : vector<8x8xf32>
    %cst_19 = arith.constant dense<0.000000e+00> : vector<8xf32>
    %46 = vector.multi_reduction <add>, %45, %cst_19 [1] : vector<8x8xf32> to vector<8xf32>
    %47 = vector.shape_cast %46 : vector<8xf32> to vector<8x1xf32>
    %48 = arith.truncf %45 : vector<8x8xf32> to vector<8x8xbf16>
    %49 = vector.extract_strided_slice %21 {offsets = [0, 8], sizes = [8, 8], strides = [1, 1]} : vector<8x32xbf16> to vector<8x8xbf16>
    %cst_20 = arith.constant dense<0.000000e+00> : vector<8x8xf32>
    %50 = tpu.matmul %48, %49, %cst_20 {dimension_numbers = #tpu.dot_dimension_numbers<[1], [0], [0], [1], [0, 0, 1, 1], [], []>} : vector<8x8xbf16>, vector<8x8xbf16>, vector<8x8xf32> -> vector<8x8xf32>
    %51 = tpu.reciprocal %47 {approx = true} : vector<8x1xf32> -> vector<8x1xf32>
    %52 = vector.broadcast %51 : vector<8x1xf32> to vector<8x8xf32>
    %53 = arith.mulf %50, %52 : vector<8x8xf32>
    %54 = vector.extract_strided_slice %19 {offsets = [0, 16], sizes = [8, 8], strides = [1, 1]} : vector<8x32xbf16> to vector<8x8xbf16>
    %55 = vector.extract_strided_slice %20 {offsets = [0, 16], sizes = [8, 8], strides = [1, 1]} : vector<8x32xbf16> to vector<8x8xbf16>
    %cst_21 = arith.constant dense<0.000000e+00> : vector<8x8xf32>
    %56 = tpu.matmul %54, %55, %cst_21 {dimension_numbers = #tpu.dot_dimension_numbers<[1], [1], [0], [0], [0, 0, 1, 0], [], []>} : vector<8x8xbf16>, vector<8x8xbf16>, vector<8x8xf32> -> vector<8x8xf32>
    %cst_22 = arith.constant dense<0xFF800000> : vector<8xf32>
    %57 = vector.multi_reduction <maximumf>, %56, %cst_22 [1] : vector<8x8xf32> to vector<8xf32>
    %58 = vector.shape_cast %57 : vector<8xf32> to vector<8x1xf32>
    %59 = vector.broadcast %58 : vector<8x1xf32> to vector<8x8xf32>
    %60 = arith.subf %56, %59 : vector<8x8xf32>
    %61 = math.exp %60 : vector<8x8xf32>
    %cst_23 = arith.constant dense<0.000000e+00> : vector<8xf32>
    %62 = vector.multi_reduction <add>, %61, %cst_23 [1] : vector<8x8xf32> to vector<8xf32>
    %63 = vector.shape_cast %62 : vector<8xf32> to vector<8x1xf32>
    %64 = arith.truncf %61 : vector<8x8xf32> to vector<8x8xbf16>
    %65 = vector.extract_strided_slice %21 {offsets = [0, 16], sizes = [8, 8], strides = [1, 1]} : vector<8x32xbf16> to vector<8x8xbf16>
    %cst_24 = arith.constant dense<0.000000e+00> : vector<8x8xf32>
    %66 = tpu.matmul %64, %65, %cst_24 {dimension_numbers = #tpu.dot_dimension_numbers<[1], [0], [0], [1], [0, 0, 1, 1], [], []>} : vector<8x8xbf16>, vector<8x8xbf16>, vector<8x8xf32> -> vector<8x8xf32>
    %67 = tpu.reciprocal %63 {approx = true} : vector<8x1xf32> -> vector<8x1xf32>
    %68 = vector.broadcast %67 : vector<8x1xf32> to vector<8x8xf32>
    %69 = arith.mulf %66, %68 : vector<8x8xf32>
    %70 = vector.extract_strided_slice %19 {offsets = [0, 24], sizes = [8, 8], strides = [1, 1]} : vector<8x32xbf16> to vector<8x8xbf16>
    %71 = vector.extract_strided_slice %20 {offsets = [0, 24], sizes = [8, 8], strides = [1, 1]} : vector<8x32xbf16> to vector<8x8xbf16>
    %cst_25 = arith.constant dense<0.000000e+00> : vector<8x8xf32>
    %72 = tpu.matmul %70, %71, %cst_25 {dimension_numbers = #tpu.dot_dimension_numbers<[1], [1], [0], [0], [0, 0, 1, 0], [], []>} : vector<8x8xbf16>, vector<8x8xbf16>, vector<8x8xf32> -> vector<8x8xf32>
    %cst_26 = arith.constant dense<0xFF800000> : vector<8xf32>
    %73 = vector.multi_reduction <maximumf>, %72, %cst_26 [1] : vector<8x8xf32> to vector<8xf32>
    %74 = vector.shape_cast %73 : vector<8xf32> to vector<8x1xf32>
    %75 = vector.broadcast %74 : vector<8x1xf32> to vector<8x8xf32>
    %76 = arith.subf %72, %75 : vector<8x8xf32>
    %77 = math.exp %76 : vector<8x8xf32>
    %cst_27 = arith.constant dense<0.000000e+00> : vector<8xf32>
    %78 = vector.multi_reduction <add>, %77, %cst_27 [1] : vector<8x8xf32> to vector<8xf32>
    %79 = vector.shape_cast %78 : vector<8xf32> to vector<8x1xf32>
    %80 = arith.truncf %77 : vector<8x8xf32> to vector<8x8xbf16>
    %81 = vector.extract_strided_slice %21 {offsets = [0, 24], sizes = [8, 8], strides = [1, 1]} : vector<8x32xbf16> to vector<8x8xbf16>
    %cst_28 = arith.constant dense<0.000000e+00> : vector<8x8xf32>
    %82 = tpu.matmul %80, %81, %cst_28 {dimension_numbers = #tpu.dot_dimension_numbers<[1], [0], [0], [1], [0, 0, 1, 1], [], []>} : vector<8x8xbf16>, vector<8x8xbf16>, vector<8x8xf32> -> vector<8x8xf32>
    %83 = tpu.reciprocal %79 {approx = true} : vector<8x1xf32> -> vector<8x1xf32>
    %84 = vector.broadcast %83 : vector<8x1xf32> to vector<8x8xf32>
    %85 = arith.mulf %82, %84 : vector<8x8xf32>
    %86 = tpu.concatenate %37, %53, %69, %85 in 1 : vector<8x8xf32>, vector<8x8xf32>, vector<8x8xf32>, vector<8x8xf32> -> vector<8x32xf32>
    %87 = arith.truncf %86 : vector<8x32xf32> to vector<8x32xbf16>
    %cst_29 = arith.constant dense<0.000000e+00> : vector<8x32xf32>
    %88 = tpu.matmul %87, %13, %cst_29 {dimension_numbers = #tpu.dot_dimension_numbers<[1], [0], [0], [1], [0, 0, 1, 1], [], []>} : vector<8x32xbf16>, vector<32x32xbf16>, vector<8x32xf32> -> vector<8x32xf32>
    %c0_i32 = arith.constant 0 : i32
    %89 = arith.cmpi eq, %arg2, %c0_i32 : i32
    %90 = arith.extui %89 : i1 to i32
    %c0_i32_30 = arith.constant 0 : i32
    %91 = arith.cmpi ne, %90, %c0_i32_30 : i32
    scf.if %91 {
      %c0_33 = arith.constant 0 : index
      %c0_34 = arith.constant 0 : index
      %c0_35 = arith.constant 0 : index
      %95 = vector.load %arg8[%c0_33, %c0_34, %c0_35] : memref<1x8x32xf32, #tpu.memory_space<vmem>>, vector<1x8x32xf32>
      %96 = vector.shape_cast %95 : vector<1x8x32xf32> to vector<8x32xf32>
      %97 = vector.shape_cast %88 : vector<8x32xf32> to vector<1x8x32xf32>
      tpu.vector_store %arg8[%c0_33, %c0_34, %c0_35], %97 {strides = array<i32>} : memref<1x8x32xf32, #tpu.memory_space<vmem>>, vector<1x8x32xf32>,
    } else {
    }
    %c0_i32_31 = arith.constant 0 : i32
    %92 = arith.cmpi ne, %arg2, %c0_i32_31 : i32
    %93 = arith.extui %92 : i1 to i32
    %c0_i32_32 = arith.constant 0 : i32
    %94 = arith.cmpi ne, %93, %c0_i32_32 : i32
    scf.if %94 {
      %c0_33 = arith.constant 0 : index
      %c0_34 = arith.constant 0 : index
      %c0_35 = arith.constant 0 : index
      %95 = vector.load %arg8[%c0_33, %c0_34, %c0_35] : memref<1x8x32xf32, #tpu.memory_space<vmem>>, vector<1x8x32xf32>
      %96 = vector.shape_cast %95 : vector<1x8x32xf32> to vector<8x32xf32>
      %97 = arith.addf %96, %88 : vector<8x32xf32>
      %c0_36 = arith.constant 0 : index
      %c0_37 = arith.constant 0 : index
      %c0_38 = arith.constant 0 : index
      %98 = vector.load %arg8[%c0_36, %c0_37, %c0_38] : memref<1x8x32xf32, #tpu.memory_space<vmem>>, vector<1x8x32xf32>
      %99 = vector.shape_cast %98 : vector<1x8x32xf32> to vector<8x32xf32>
      %100 = vector.shape_cast %97 : vector<8x32xf32> to vector<1x8x32xf32>
      tpu.vector_store %arg8[%c0_36, %c0_37, %c0_38], %100 {strides = array<i32>} : memref<1x8x32xf32, #tpu.memory_space<vmem>>, vector<1x8x32xf32>,
    } else {
    }
    return
  }
  func.func @transform_0(%arg0: i32, %arg1: i32, %arg2: i32) -> (i32, i32, i32) {
    %c0_i32 = arith.constant 0 : i32
    %c0_i32_0 = arith.constant 0 : i32
    %c0_i32_1 = arith.constant 0 : i32
    return %arg0, %c0_i32, %c0_i32_0 : i32, i32, i32
  }
  func.func @transform_1(%arg0: i32, %arg1: i32, %arg2: i32) -> (i32, i32, i32) {
    %c0_i32 = arith.constant 0 : i32
    %c0_i32_0 = arith.constant 0 : i32
    %c0_i32_1 = arith.constant 0 : i32
    %c0_i32_2 = arith.constant 0 : i32
    return %c0_i32, %c0_i32_0, %c0_i32_1 : i32, i32, i32
  }
  func.func @transform_2(%arg0: i32, %arg1: i32, %arg2: i32) -> (i32, i32, i32) {
    %c0_i32 = arith.constant 0 : i32
    %c0_i32_0 = arith.constant 0 : i32
    %c0_i32_1 = arith.constant 0 : i32
    %c0_i32_2 = arith.constant 0 : i32
    return %c0_i32, %c0_i32_0, %c0_i32_1 : i32, i32, i32
  }
  func.func @transform_3(%arg0: i32, %arg1: i32, %arg2: i32) -> (i32, i32, i32) {
    %c0_i32 = arith.constant 0 : i32
    %c0_i32_0 = arith.constant 0 : i32
    %c0_i32_1 = arith.constant 0 : i32
    %c0_i32_2 = arith.constant 0 : i32
    return %c0_i32, %c0_i32_0, %c0_i32_1 : i32, i32, i32
  }
  func.func @transform_4(%arg0: i32, %arg1: i32, %arg2: i32) -> (i32, i32, i32) {
    %c0_i32 = arith.constant 0 : i32
    %c0_i32_0 = arith.constant 0 : i32
    %c0_i32_1 = arith.constant 0 : i32
    %c0_i32_2 = arith.constant 0 : i32
    return %c0_i32, %c0_i32_0, %c0_i32_1 : i32, i32, i32
  }
  func.func @transform_5(%arg0: i32, %arg1: i32, %arg2: i32) -> (i32, i32, i32) {
    %c0_i32 = arith.constant 0 : i32
    %c0_i32_0 = arith.constant 0 : i32
    return %arg0, %arg1, %c0_i32 : i32, i32, i32
  }
}

</mosaic_0001>

<bundles_post_ra>
// kernel: tpu_custom_call.1
= control target key start
LH: loop header
LB: loop body
LE: loop exit
PB: predicated region body
PF: predicated region fallthrough
CT: control target
= control target key end

     0   :  { %10 = vsyncpa [#allocation3], 0  ;;  %s2130_s0 = inlined_call_operand.hbm [shape: bf16[2,8,32], index: 0, kind: input, shape index: {}]   ;;  %s2131_s1 = inlined_call_operand.hbm [shape: bf16[1,32,32], index: 1, kind: input, shape index: {}]   ;;  %s2132_s2 = inlined_call_operand.hbm [shape: bf16[1,32,32], index: 2, kind: input, shape index: {}]   ;;  %s2133_s3 = inlined_call_operand.hbm [shape: bf16[1,32,32], index: 3, kind: input, shape index: {}]   ;;  %s2134_s4 = inlined_call_operand.hbm [shape: bf16[1,32,32], index: 4, kind: input, shape index: {}]   ;;  %s2135_s5 = inlined_call_operand.hbm [shape: f32[2,8,32], index: 5, kind: output, shape index: {}]  }
   0x1   :  { %12 = vsyncpa [#allocation3 + $0x1], 0 }
   0x2   :  { %13 = vsyncpa [#allocation6], 0 }
   0x3   :  { %14 = vsyncpa [#allocation9], 0 }
   0x4   :  { %15 = vsyncpa [#allocation4], 0 }
   0x5   :  { %17 = vsyncpa [#allocation4 + $0x1], 0  ;;  %s1743_s18 = smov 0   ;;  %s1745_s19 = smov 0  }
   0x6   :  { %s1747_s20 = smov 0   ;;  %s1749_s21 = smov 0  }
   0x7   :  { %s1751_s22 = smov 0   ;;  %s1753_s23 = smov 0  }
   0x8 LB: > { %s1177_s24 = sadd.s32 4294967295, %s1695_s23   ;;  %p1179_p0 = scmp.ge.s32.totalorder %s1695_s23, 1  ;;  %s1695_s23 = sphi %s1753_s23, %s23_s23   ;;  %s1691_s22 = sphi %s1751_s22, %s2159_s22   ;;  %s1687_s21 = sphi %s1749_s21, %s2158_s21   ;;  %s1683_s20 = sphi %s1747_s20, %s2157_s20   ;;  %s1679_s19 = sphi %s1745_s19, %s2156_s19   ;;  %s1675_s18 = sphi %s1743_s18, %s2155_s18  }
   0x9   : > { %p1777_p1 = scmp.eq.s32.totalorder %s1177_s24, 0  ;;  %p185_p2 = scmp.lt.s32.totalorder %s1695_s23, 3 }
   0xa   : > { %s1697_s27 = smov [#allocation5]   ;;  %s1698_s30 = smov [#allocation8]  }
   0xb   : > { %s2140_s25 = scalar_select %p1777_p1, 1, 0 }
   0xc   : > { %p1782_p3 = pnand %p1179_p0, %p185_p2  ;;  %s197_s28 = sshll.u32 %s1697_s27, 4  ;;  %s1786_s28 = int_to_ptr.vmem [resolvable:$true] %s197_s28 }
   0xd   : > { %s223_s6 = sshll.u32 %s1698_s30, 4  ;;  %s1699_s7 = smov [#allocation7]   ;;  %s1797_s6 = int_to_ptr.vmem [resolvable:$true] %s223_s6 }
   0xe   : > { %s2141_s26 = scalar_select %p1782_p3, 1, 0 }
   0xf   : > { %p1346_p4 = pneg %p1782_p3  ;;  %s1799_s8 = sshll.u32 %s1699_s7, 4  ;;  %s211_s8 = int_to_ptr.vmem [resolvable:$true] %s1799_s8 }
  0x10   : > { %s1463_s11 = scalar_lea.hbm %s2131_s1, 256 }
  0x11   : > { %p1793_p6 = pnand %p1346_p4, %p1777_p1  ;;  %p1464_p7 = scmp.ne.s32.totalorder %s2131_s1, %s1463_s11 }
  0x12   : > { %p1470_p11 = scmp.lt.u32.totalorder %s1463_s11, %s2131_s1 }
  0x13   : > { %p1809_p8 = pneg %p1793_p6 }
  0x15   : > { %p1466_p9 = pnand %p1809_p8, %p1464_p7 }
  0x17   : > { %p1467_p10 = pneg %p1466_p9 }
  0x19   : > { %p1472_p12 = pnand %p1470_p11, %p1467_p10 }
  0x1b   : > { %1475 = shalt.err (!%p1472_p12)
}
  0x1c   : > { %s1476_s17 = scalar_lea.vmem %s1786_s28, 256  ;;  %p1484_p4 = scmp.lt.s32.totalorder %s1786_s28, %s1786_s28 }
  0x1d   : > { %p1477_p13 = scmp.ne.s32.totalorder %s1786_s28, %s1476_s17  ;;  %p1485_p5 = scmp.lt.s32.totalorder %s1476_s17, %s1476_s17 }
  0x1f   : > { %p1479_p0 = pnand %p1477_p13, %p1809_p8  ;;  %p1486_p7 = por %p1485_p5, %p1484_p4 }
  0x21   : > { %p1480_p2 = pneg %p1479_p0 }
  0x23   : > { %p1487_p9 = pnand %p1486_p7, %p1480_p2 }
  0x25   : > { %1490 = shalt.err (!%p1487_p9)
}
  0x26   : > { %s1700_s27 = smov 64   ;;  %s1701_s30 = smov 4  }
  0x27   : > { %1349 = dma.hbm_to_vmem [thread:$0]  (!%p1793_p6), %s2131_s1, 256, %s1786_s28, [#allocation6], %s1700_s27, %s1700_s27, %s1701_s30  }
  0x28   : > { %s1491_s12 = scalar_lea.hbm %s2133_s3, 256 }
  0x29   : > { %p1492_p5 = scmp.ne.s32.totalorder %s2133_s3, %s1491_s12  ;;  %p1498_p12 = scmp.lt.u32.totalorder %s1491_s12, %s2133_s3 }
  0x2b   : > { %p1494_p10 = pnand %p1492_p5, %p1809_p8 }
  0x2d   : > { %p1495_p11 = pneg %p1494_p10 }
  0x2f   : > { %p1500_p13 = pnand %p1498_p12, %p1495_p11 }
  0x31   : > { %1503 = shalt.err (!%p1500_p13)
}
  0x32   : > { %s1504_s28 = scalar_lea.vmem %s1797_s6, 256  ;;  %p1512_p7 = scmp.lt.s32.totalorder %s1797_s6, %s1797_s6 }
  0x33   : > { %p1505_p0 = scmp.ne.s32.totalorder %s1797_s6, %s1504_s28  ;;  %p1513_p9 = scmp.lt.s32.totalorder %s1504_s28, %s1504_s28 }
  0x35   : > { %p1507_p2 = pnand %p1505_p0, %p1809_p8  ;;  %p1514_p5 = por %p1513_p9, %p1512_p7 }
  0x37   : > { %p1508_p4 = pneg %p1507_p2 }
  0x39   : > { %p1515_p10 = pnand %p1514_p5, %p1508_p4 }
  0x3b   : > { %1518 = shalt.err (!%p1515_p10)
}
  0x3c   : > { %1355 = dma.hbm_to_vmem [thread:$0]  (!%p1793_p6), %s2133_s3, 256, %s1797_s6, [#allocation9], %s1700_s27, %s1700_s27, %s1701_s30  }
  0x3d   : > { %s1519_s12 = scalar_lea.hbm %s2132_s2, 256 }
  0x3e   : > { %p1520_p11 = scmp.ne.s32.totalorder %s2132_s2, %s1519_s12  ;;  %p1526_p0 = scmp.lt.u32.totalorder %s1519_s12, %s2132_s2 }
  0x40   : > { %p1522_p12 = pnand %p1520_p11, %p1809_p8 }
  0x42   : > { %p1523_p13 = pneg %p1522_p12 }
  0x44   : > { %p1528_p2 = pnand %p1526_p0, %p1523_p13 }
  0x46   : > { %1531 = shalt.err (!%p1528_p2)
}
  0x47   : > { %s1532_s28 = scalar_lea.vmem %s211_s8, 256  ;;  %p1540_p5 = scmp.lt.s32.totalorder %s211_s8, %s211_s8 }
  0x48   : > { %p1533_p4 = scmp.ne.s32.totalorder %s211_s8, %s1532_s28  ;;  %p1541_p10 = scmp.lt.s32.totalorder %s1532_s28, %s1532_s28 }
  0x4a   : > { %p1535_p7 = pnand %p1533_p4, %p1809_p8  ;;  %p1542_p3 = por %p1541_p10, %p1540_p5 }
  0x4c   : > { %p1536_p9 = pneg %p1535_p7 }
  0x4e   : > { %p1543_p1 = pnand %p1542_p3, %p1536_p9 }
  0x50   : > { %1546 = shalt.err (!%p1543_p1)
}
  0x51   : > { %1352 = dma.hbm_to_vmem [thread:$0]  (!%p1793_p6), %s2132_s2, 256, %s211_s8, [#allocation6], %s1700_s27, %s1700_s27, %s1701_s30  }
  0x52   : > { %s1702_s9 = smov [#allocation10]   ;;  %s1547_s13 = scalar_lea.hbm %s2134_s4, 256 }
  0x53   : > { %s236_s10 = sshll.u32 %s1702_s9, 4  ;;  %p1548_p1 = scmp.ne.s32.totalorder %s2134_s4, %s1547_s13  ;;  %s237_s10 = int_to_ptr.vmem [resolvable:$true] %s236_s10 }
  0x54   : > { %p1554_p12 = scmp.lt.u32.totalorder %s1547_s13, %s2134_s4 }
  0x55   : > { %p1550_p3 = pnand %p1548_p1, %p1809_p8 }
  0x57   : > { %p1551_p11 = pneg %p1550_p3 }
  0x59   : > { %p1556_p13 = pnand %p1554_p12, %p1551_p11 }
  0x5b   : > { %1559 = shalt.err (!%p1556_p13)
}
  0x5c   : > { %s1560_s8 = scalar_lea.vmem %s237_s10, 256  ;;  %p1568_p7 = scmp.lt.s32.totalorder %s237_s10, %s237_s10 }
  0x5d   : > { %p1561_p0 = scmp.ne.s32.totalorder %s237_s10, %s1560_s8  ;;  %p1569_p9 = scmp.lt.s32.totalorder %s1560_s8, %s1560_s8 }
  0x5f   : > { %p1563_p2 = pnand %p1561_p0, %p1809_p8  ;;  %p1570_p5 = por %p1569_p9, %p1568_p7 }
  0x61   : > { %p1564_p4 = pneg %p1563_p2 }
  0x63   : > { %p1571_p10 = pnand %p1570_p5, %p1564_p4 }
  0x65   : > { %1574 = shalt.err (!%p1571_p10)
}
  0x66   : > { %1358 = dma.hbm_to_vmem [thread:$0]  (!%p1793_p6), %s2134_s4, 256, %s237_s10, [#allocation9], %s1700_s27, %s1700_s27, %s1701_s30  }
  0x67   : > { %s1178_s29 = sadd.s32 4294967294, %s1695_s23   ;;  %s42_s14 = sadd.s32 1, %s1691_s22 }
  0x68   : > { %p44_p8 = scmp.ge.s32.totalorder %s42_s14, 2  ;;  %s49_s9 = sadd.s32 1, %s1683_s20 }
  0x69   : > { %p56_p1 = scmp.ne.s32.totalorder %s1683_s20, %s1679_s19  ;;  %p57_p3 = scmp.eq.s32.totalorder %s1695_s23, 0 }
  0x6a   : > { %s2161_s14 = smov (%p44_p8, %s42_s14), 0  ;;  %p62_p12 = scmp.ne.s32.totalorder %s1679_s19, %s1675_s18 }
  0x6b   : > { %p1910_p11 = por %p57_p3, %p56_p1  ;;  %s46_s27 = ssub.s32 %s1691_s22, %s2161_s14 }
  0x6c   : > { %p172_p6 = scmp.eq.s32.totalorder %s1177_s24, 1  ;;  %p47_p13 = scmp.eq.s32.totalorder %s46_s27, 0 }
  0x6d   : > { %p2145_p0 = scmp.ne.s32.totalorder %s2140_s25, 0  ;;  %p178_p7 = scmp.eq.s32.totalorder %s1178_s29, 1 }
  0x6e   : > { %p1926_p4 = por %p172_p6, %p56_p1  ;;  %p1371_p5 = scmp.lt.s32.totalorder %s1695_s23, 2 }
  0x6f   : > { %p1922_p2 = por %p2145_p0, %p62_p12  ;;  %p1933_p9 = por %p178_p7, %p62_p12 }
  0x70   : > { %s2147_s10 = scalar_select %p1926_p4, 1, 0 }
  0x71   : > { %s1931_s12 = scalar_select %p47_p13, %s1683_s20, %s49_s9  }
  0x72   : > { %s2148_s13 = scalar_select %p1933_p9, 1, 0 }
  0x73   : > { %s250_s15 = sand.u32 1, %s1683_s20   ;;  %s1186_s24 = sshll.u32 %s1691_s22, 6 }
  0x74   : > { %s1185_s16 = sshll.u32 %s250_s15, 2  ;;  %s1943_s8 = scalar_lea.hbm %s2130_s0, %s1186_s24 }
  0x75   : > { %s254_s6 = scalar_lea.vmem [#allocation2], %s1185_s16  ;;  %p1947_p10 = pnand %p1371_p5, %p1910_p11 }
  0x76   : > { %s261_s7 = sshll.u32 %s254_s6, 4  ;;  %s251_s9 = scalar_lea.sflag [#allocation3], %s250_s15  ;;  %s1951_s7 = int_to_ptr.vmem [resolvable:$true] %s261_s7 }
  0x77   : > { %s1575_s27 = scalar_lea.hbm %s1943_s8, 64  ;;  %p1577_p1 = pneg %p1947_p10 }
  0x78   : > { %p1576_p8 = scmp.ne.s32.totalorder %s1943_s8, %s1575_s27  ;;  %s1580_s11 = scalar_lea.hbm %s2130_s0, 128 }
  0x79   : > { %p1581_p11 = scmp.lt.u32.totalorder %s1943_s8, %s2130_s0  ;;  %p1582_p6 = scmp.lt.u32.totalorder %s1580_s11, %s1575_s27 }
  0x7a   : > { %p1578_p3 = pnand %p1577_p1, %p1576_p8  ;;  %p1584_p0 = scmp.lt.u32.totalorder %s1575_s27, %s1943_s8 }
  0x7b   : > { %p1583_p13 = por %p1582_p6, %p1581_p11 }
  0x7c   : > { %p1579_p12 = pneg %p1578_p3 }
  0x7d   : > { %p1585_p7 = por %p1584_p0, %p1583_p13 }
  0x7f   : > { %p1586_p5 = pnand %p1585_p7, %p1579_p12 }
  0x81   : > { %1589 = shalt.err (!%p1586_p5)
}
  0x82   : > { %s1590_s15 = scalar_lea.vmem %s1951_s7, 64  ;;  %s1703_s6 = smov [#allocation2]  }
  0x83   : > { %p1591_p8 = scmp.ne.s32.totalorder %s1951_s7, %s1590_s15  ;;  %s1595_s24 = sshll.u32 %s1703_s6, 4  ;;  %s1596_s24 = int_to_ptr.vmem [resolvable:$false] %s1595_s24 }
  0x84   : > { %s1597_s16 = scalar_lea.vmem %s1596_s24, 128  ;;  %p1598_p4 = scmp.lt.s32.totalorder %s1951_s7, %s1596_s24 }
  0x85   : > { %p1593_p3 = pnand %p1591_p8, %p1577_p1  ;;  %p1599_p11 = scmp.lt.s32.totalorder %s1597_s16, %s1590_s15 }
  0x87   : > { %p1594_p9 = pneg %p1593_p3  ;;  %p1600_p6 = por %p1599_p11, %p1598_p4 }
  0x89   : > { %p1601_p13 = pnand %p1600_p6, %p1594_p9 }
  0x8b   : > { %1604 = shalt.err (!%p1601_p13)
}
  0x8c   : > { %1362 = dma.hbm_to_vmem [thread:$0]  (!%p1947_p10), %s1943_s8, 64, %s1951_s7, %s251_s9  }
  0x8d   : > { %p2150_p12 = scmp.ne.s32.totalorder %s2141_s26, 0 }
  0x8e   : > { %s1981_s27 = sand.u32 (!%p2150_p12), 1, %s1679_s19  }
  0x8f   : > { %270 = sbr.rel (%p2150_p12) target bundleno = 1452 (0x5ac), region = 40  ;;  %s1188_s11 = sshll.u32 (!%p2150_p12), %s1981_s27, 2 }
  0x90   : > { %s273_s17 = scalar_lea.sflag (!%p2150_p12), [#allocation3], %s1981_s27  ;;  %s276_s28 = scalar_lea.vmem (!%p2150_p12), [#allocation2], %s1188_s11 }
  0x96   : > { %1658 = dma.done.wait (%p1922_p2), %s273_s17, 64  }
  0x97   : > { %1660 = vsyncadd (%p1922_p2), %s273_s17, 4294967232  ;;  %p2151_p4 = scmp.ne.s32.totalorder %s2140_s25, 0 }
  0x99   : > { %1662 = dma.done.wait (%p2151_p4), [#allocation6], 512  }
  0x9a   : > { %1664 = vsyncadd (%p2151_p4), [#allocation6], 4294966784 }
  0x9b   : > { %1666 = dma.done.wait (%p2151_p4), [#allocation9], 512  }
  0x9c   : > { %1668 = vsyncadd (%p2151_p4), [#allocation9], 4294966784  ;;  %v1704_v0 = vmov 0.0   ;;  %vm1705_vm0 = vmmov 0   ;;  %v1439_v1 = vld [vmem:[#allocation7] sm:$0xff]   ;;  %v1440_v2 = vld [vmem:[#allocation7 + $0x8] sm:$0xff]  }
  0x9d   : > { %1246 = vmatprep.subr.bf16.mxu0 %v1704_v0  ;;  %1250 = vmatprep.mubr.msk.bf16.mxu0 %vm1705_vm0, %v1704_v0  ;;  %v320_v3 = vld [vmem:[%s276_s28] sm:$0xf]  ;;  %v1443_v4 = vld [vmem:[#allocation8] sm:$0xff]   ;;  %vm358_vm1 = vcmask 261120   ;;  %v1444_v6 = vld [vmem:[#allocation8 + $0x8] sm:$0xff]   ;;  %vm510_vm2 = vcmask 64512  }
  0x9e   : > { %1254 = vmatprep.subr.bf16.mxu1 %v1704_v0  ;;  %1258 = vmatprep.mubr.msk.bf16.mxu1 %vm1705_vm0, %v1704_v0  ;;  %v1441_v5 = vld [vmem:[#allocation5] sm:$0xff]   ;;  %v1442_v7 = vld [vmem:[#allocation5 + $0x8] sm:$0xff]   ;;  %s1706_s25 = smov 112   ;;  %s1707_s26 = smov 120   ;;  %vm570_vm3 = vcmask 1043456   ;;  %vm962_vm4 = vcmask 130048  }
  0x9f   : > { %1247 = vmatpush3.bf16.msra.mxu0 %v1439_v1  ;;  %1255 = vmatpush3.bf16.msra.mxu1 %v1443_v4  ;;  %s1708_s30 = smov 104   ;;  %s1709_s8 = smov 8   ;;  %vm964_vm5 = vcmask 195584  }
  0xa0   : > { %1248 = vmatprep.subr.bf16.mxu0 %v1704_v0  ;;  %1256 = vmatprep.subr.bf16.mxu1 %v1704_v0  ;;  %s1710_s7 = smov 16   ;;  %s1711_s29 = smov 24  }
  0xa1   : > { %s1193_s9 = sshll.u32 %s1981_s27, 3  ;;  %s1215_s15 = sshll.u32 %s1687_s21, 7 }
  0xa2   : > { %s318_s6 = scalar_lea.vmem [#allocation11], %s1193_s9  ;;  %s2080_s17 = scalar_lea.hbm %s2135_s5, %s1215_s15 }
  0xa3   : > { %1249 = vmatpush3.bf16.msra.mxu0 %v1440_v2  ;;  %1257 = vmatpush3.bf16.msra.mxu1 %v1444_v6  ;;  %s1049_s24 = sshll.u32 %s318_s6, 4  ;;  %s1035_s28 = scalar_lea.sflag [#allocation4], %s1981_s27  ;;  %s2082_s24 = int_to_ptr.vmem [resolvable:$true] %s1049_s24 }
  0xa4   : > { %1262 = vmatprep.subr.bf16.mxu0 %v1704_v0  ;;  %1270 = vmatprep.subr.bf16.mxu1 %v1704_v0  ;;  %p2152_p9 = scmp.ne.s32.totalorder %s2147_s10, 0  ;;  %s1712_s21 = smov [#allocation11]  }
  0xa6   : > { %1251 = vmatmul.mubr.msk.bf16.vlgmr.msra.gmra.mrb[0].mxu0 %vm358_vm1, %v320_v3  ;;  %1259 = vmatmul.mubr.msk.bf16.vlgmr.msra.gmra.mrb[0].mxu1 %vm358_vm1, %v320_v3 }
  0xa7   : > { %1263 = vmatpush3.bf16.msra.mxu0 %v1441_v5  ;;  %1266 = vmatprep.mubr.msk.bf16.mxu0 %vm1705_vm0, %v1704_v0 }
  0xa8   : > { %1264 = vmatprep.subr.bf16.mxu0 %v1704_v0  ;;  %1272 = vmatprep.mubr.msk.bf16.mxu1 %vm1705_vm0, %v1704_v0 }
  0xab   : > { %1265 = vmatpush3.bf16.msra.mxu0 %v1442_v7 }
  0xac   : > { %1276 = vmatprep.subr.bf16.mxu0 %v1704_v0 }
  0xae   : > { %1267 = vmatmul.mubr.msk.bf16.vlgmr.msra.gmra.mrb[4].mxu0 %vm358_vm1, %v320_v3 }
  0xaf   : > { %1278 = vmatprep.mubr.msk.bf16.mxu0 %vm1705_vm0, %v1704_v0 }
 0x179   : > { %v396_v8 = vpop.f32.mrb[0].mxu0  ;;  %v448_v20 = vpop.f32.mrb[0].mxu1 }
 0x17a   : > { %v508_v9 = vpack.c.bf16 %v396_v8, %v396_v8  ;;  %v1252_v10 = vpop.f32.mrb[1].mxu0  ;;  %v1260_v21 = vpop.f32.mrb[1].mxu1  ;;  %v509_v24 = vpack.c.bf16 %v448_v20, %v448_v20 }
 0x17b   : > { %v399_v11 = vpop.f32.mrb[2].mxu0  ;;  %v451_v22 = vpop.f32.mrb[2].mxu1 }
 0x17c   : > { %731 = vrot.lane.b32.xlu1 %v508_v9, %s1706_s25  ;;  %620 = vrot.lane.b32.xlu0 %v508_v9, %s1707_s26  ;;  %v1253_v12 = vpop.f32.mrb[3].mxu0  ;;  %v515_v13 = vsel %vm510_vm2, %v508_v9, 0  ;;  %v1261_v23 = vpop.f32.mrb[3].mxu1  ;;  %v572_v25 = vsel %vm570_vm3, %v509_v24, 0 }
 0x17d   : > { %1271 = vmatpush3.bf16.xpose.msra.mxu1 %v515_v13  ;;  %1277 = vmatpush3.bf16.msra.mxu0 %v572_v25 }
 0x17e   : > { %1282 = vmatprep.subr.bf16.mxu1 %v1704_v0  ;;  %1288 = vmatprep.subr.bf16.mxu0 %v1704_v0 }
 0x181   : > { %v500_v14 = vpop.f32.mrb[4].mxu0 }
 0x182   : > { %v506_v15 = vmul.f32 0.17677669, %v500_v14  ;;  %v1268_v16 = vpop.f32.mrb[5].mxu0 }
 0x183   : > { %v503_v17 = vpop.f32.mrb[6].mxu0 }
 0x184   : > { %v507_v18 = vpack.c.bf16 %v506_v15, %v506_v15  ;;  %v1269_v19 = vpop.f32.mrb[7].mxu0 }
 0x186   : > { %729 = vrot.lane.b32.xlu1 %v507_v18, %s1706_s25  ;;  %617 = vrot.lane.b32.xlu0 %v507_v18, %s1707_s26 }
 0x187   : > { %1273 = vmatmul.mubr.msk.bf16.vlgmr.msra.gmra.mrb[4].mxu1 %vm510_vm2, %v507_v18 }
 0x188   : > { %1284 = vmatprep.mubr.msk.bf16.mxu1 %vm1705_vm0, %v1704_v0 }
 0x18a   : > { %839 = vrot.lane.b32.xlu1 %v507_v18, %s1708_s30  ;;  %841 = vrot.lane.b32.xlu0 %v508_v9, %s1708_s30 }
 0x1ee   : > { %v621_v26 = vpop.permute.xlu0 %620  ;;  %v732_v28 = vpop.permute.xlu1 %731 }
 0x1ef   : > { %v626_v27 = vsel %vm510_vm2, %v621_v26, 0  ;;  %v737_v30 = vsel %vm510_vm2, %v732_v28, 0  ;;  %v1445_v28 = vld [vmem:[#allocation10] sm:$0xff]  }
 0x1f0   : > { %1283 = vmatpush3.bf16.xpose.msra.mxu1 %v626_v27 }
 0x1f1   : > { %1294 = vmatprep.subr.bf16.mxu1 %v1704_v0 }
 0x1f8   : > { %v618_v29 = vpop.permute.xlu0 %617  ;;  %v730_v32 = vpop.permute.xlu1 %729 }
 0x1f9   : > { %1285 = vmatmul.mubr.msk.bf16.vlgmr.msra.gmra.mrb[8].mxu1 %vm510_vm2, %v618_v29 }
 0x1fa   : > { %1295 = vmatpush3.bf16.xpose.msra.mxu1 %v737_v30  ;;  %1296 = vmatprep.mubr.msk.bf16.mxu1 %vm1705_vm0, %v1704_v0 }
 0x1fb   : > { %1306 = vmatprep.subr.bf16.mxu1 %v1704_v0 }
 0x1fc   : > { %v842_v31 = vpop.permute.xlu0 %841  ;;  %v840_v34 = vpop.permute.xlu1 %839 }
 0x1fd   : > { %v847_v33 = vsel %vm510_vm2, %v842_v31, 0 }
 0x201   : > { %1297 = vmatmul.mubr.msk.bf16.vlgmr.msra.gmra.mrb[12].mxu1 %vm510_vm2, %v730_v32 }
 0x202   : > { %1307 = vmatpush3.bf16.xpose.msra.mxu1 %v847_v33  ;;  %1308 = vmatprep.mubr.msk.bf16.mxu1 %vm1705_vm0, %v1704_v0 }
 0x203   : > { %1318 = vmatprep.subr.bf16.mxu1 %v1704_v0 }
 0x209   : > { %1309 = vmatmul.mubr.msk.bf16.vlgmr.msra.gmra.mrb[16].mxu1 %vm510_vm2, %v840_v34 }
 0x20a   : > { %1322 = vmatprep.mubr.msk.bf16.mxu1 %vm1705_vm0, %v1704_v0  ;;  %1319 = vmatpush3.bf16.msra.mxu1 %v1445_v28 }
 0x20b   : > { %1320 = vmatprep.subr.bf16.mxu1 %v1704_v0 }
 0x25a   : > { %v551_v35 = vpop.f32.mrb[4].mxu1 }
 0x25b   : > { %v1274_v36 = vpop.f32.mrb[5].mxu1  ;;  %v557_v37 = vsel %vm510_vm2, %v551_v35, -inf }
 0x25c   : > { %558 = vmax.xlane.f32.xlu0 %v557_v37  ;;  %v554_v38 = vpop.f32.mrb[6].mxu1  ;;  %v1446_v36 = vld [vmem:[#allocation10 + $0x8] sm:$0xff]  }
 0x25d   : > { %v1275_v39 = vpop.f32.mrb[7].mxu1  ;;  %1321 = vmatpush3.bf16.msra.mxu1 %v1446_v36 }
 0x2cc   : > { %v662_v40 = vpop.f32.mrb[8].mxu1 }
 0x2cd   : > { %v1286_v41 = vpop.f32.mrb[9].mxu1  ;;  %v668_v42 = vsel %vm510_vm2, %v662_v40, -inf }
 0x2ce   : > { %669 = vmax.xlane.f32.xlu1 %v668_v42  ;;  %v665_v43 = vpop.f32.mrb[10].mxu1 }
 0x2cf   : > { %v1287_v44 = vpop.f32.mrb[11].mxu1 }
 0x2d4   : > { %v773_v45 = vpop.f32.mrb[12].mxu1 }
 0x2d5   : > { %v1298_v46 = vpop.f32.mrb[13].mxu1  ;;  %v779_v47 = vsel %vm510_vm2, %v773_v45, -inf }
 0x2d6   : > { %780 = vmax.xlane.f32.xlu0 %v779_v47  ;;  %v776_v48 = vpop.f32.mrb[14].mxu1 }
 0x2d7   : > { %v1299_v49 = vpop.f32.mrb[15].mxu1 }
 0x2dc   : > { %v883_v50 = vpop.f32.mrb[16].mxu1 }
 0x2dd   : > { %v1310_v51 = vpop.f32.mrb[17].mxu1  ;;  %v889_v52 = vsel %vm510_vm2, %v883_v50, -inf }
 0x2de   : > { %890 = vmax.xlane.f32.xlu0 %v889_v52  ;;  %v886_v53 = vpop.f32.mrb[18].mxu1 }
 0x2df   : > { %679 = vrot.lane.b32.xlu1 %v509_v24, %s1707_s26  ;;  %v1311_v54 = vpop.f32.mrb[19].mxu1  ;;  %s1609_s26 = sshll.u32 %s1712_s21, 4  ;;  %s1610_s26 = int_to_ptr.vmem [resolvable:$false] %s1609_s26 }
 0x2e0   : > { %p1612_p0 = scmp.lt.s32.totalorder %s2082_s24, %s1610_s26 }
 0x2e3   : > { %899 = vrot.lane.b32.xlu1 %v509_v24, %s1708_s30  ;;  %s1611_s30 = scalar_lea.vmem %s1610_s26, 256 }
 0x2e9   : > { %v559_v55 = vpop.xlane.xlu0 %558 }
 0x2ea   : > { %v560_v56 = vsub.f32 %v551_v35, %v559_v55 }
 0x2ec   : > { %v561_v57 = vmul.f32 1.442695, %v560_v56 }
 0x2ee   : > { %1447 = vpow2.f32 %v561_v57 }
 0x2f4   : > { %789 = vrot.lane.b32.xlu0 %v509_v24, %s1706_s25  ;;  %s1605_s25 = scalar_lea.vmem %s2082_s24, 128 }
 0x2f5   : > { %p1606_p2 = scmp.ne.s32.totalorder %s2082_s24, %s1605_s25  ;;  %p1613_p7 = scmp.lt.s32.totalorder %s1611_s30, %s1605_s25 }
 0x2f7   : > { %p1607_p10 = pnand %p1606_p2, %p2152_p9  ;;  %p1614_p5 = por %p1613_p7, %p1612_p0 }
 0x2f8   : > { %v1448_v58 = vpop.eup %1447 }
 0x2f9   : > { %v566_v59 = vpack.c.bf16 %v1448_v58, %v1448_v58  ;;  %v563_v12 = vsel %vm510_vm2, %v1448_v58, 0.0  ;;  %p1608_p1 = pneg %p1607_p10 }
 0x2fb   : > { %1279 = vmatmul.mubr.msk.bf16.vlgmr.msra.gmra.mrb[8].mxu0 %vm510_vm2, %v566_v59  ;;  %p1615_p8 = pnand %p1614_p5, %p1608_p1 }
 0x2fc   : > { %1290 = vmatprep.mubr.msk.bf16.mxu0 %vm1705_vm0, %v1704_v0 }
 0x35b   : > { %v670_v60 = vpop.xlane.xlu1 %669 }
 0x35c   : > { %v671_v61 = vsub.f32 %v662_v40, %v670_v60 }
 0x35e   : > { %v672_v62 = vmul.f32 1.442695, %v671_v61 }
 0x35f   : > { %v680_v63 = vpop.permute.xlu1 %679 }
 0x360   : > { %1449 = vpow2.f32 %v672_v62  ;;  %v685_v1 = vsel %vm570_vm3, %v680_v63, 0 }
 0x361   : > { %1289 = vmatpush3.bf16.msra.mxu0 %v685_v1 }
 0x362   : > { %1300 = vmatprep.subr.bf16.mxu0 %v1704_v0 }
 0x363   : > { %v781_v2 = vpop.xlane.xlu0 %780  ;;  %v900_v15 = vpop.permute.xlu1 %899 }
 0x364   : > { %v782_v3 = vsub.f32 %v773_v45, %v781_v2  ;;  %v905_v18 = vsel %vm570_vm3, %v900_v15, 0 }
 0x366   : > { %v783_v4 = vmul.f32 1.442695, %v782_v3 }
 0x368   : > { %1451 = vpow2.f32 %v783_v4 }
 0x36a   : > { %v1450_v5 = vpop.eup %1449 }
 0x36b   : > { %v891_v6 = vpop.xlane.xlu0 %890  ;;  %v674_v7 = vsel %vm510_vm2, %v1450_v5, 0.0  ;;  %v677_v8 = vpack.c.bf16 %v1450_v5, %v1450_v5 }
 0x36c   : > { %v892_v9 = vsub.f32 %v883_v50, %v891_v6  ;;  %675 = vadd.xlane.f32.xlu1 %v674_v7 }
 0x36d   : > { %1291 = vmatmul.mubr.msk.bf16.vlgmr.msra.gmra.mrb[12].mxu0 %vm510_vm2, %v677_v8 }
 0x36e   : > { %v893_v10 = vmul.f32 1.442695, %v892_v9  ;;  %1302 = vmatprep.mubr.msk.bf16.mxu0 %vm1705_vm0, %v1704_v0 }
 0x36f   : > { %v790_v11 = vpop.permute.xlu0 %789 }
 0x370   : > { %1453 = vpow2.f32 %v893_v10  ;;  %v795_v13 = vsel %vm570_vm3, %v790_v11, 0  ;;  %564 = vadd.xlane.f32.xlu1 %v563_v12 }
 0x371   : > { %1301 = vmatpush3.bf16.msra.mxu0 %v795_v13 }
 0x372   : > { %v1452_v14 = vpop.eup %1451  ;;  %1312 = vmatprep.subr.bf16.mxu0 %v1704_v0 }
 0x373   : > { %v785_v16 = vsel %vm510_vm2, %v1452_v14, 0.0  ;;  %v788_v17 = vpack.c.bf16 %v1452_v14, %v1452_v14 }
 0x374   : > { %786 = vadd.xlane.f32.xlu0 %v785_v16 }
 0x375   : > { %1303 = vmatmul.mubr.msk.bf16.vlgmr.msra.gmra.mrb[16].mxu0 %vm510_vm2, %v788_v17 }
 0x376   : > { %1313 = vmatpush3.bf16.msra.mxu0 %v905_v18  ;;  %1314 = vmatprep.mubr.msk.bf16.mxu0 %vm1705_vm0, %v1704_v0 }
 0x37a   : > { %v1454_v19 = vpop.eup %1453 }
 0x37b   : > { %v895_v20 = vsel %vm510_vm2, %v1454_v19, 0.0  ;;  %v898_v21 = vpack.c.bf16 %v1454_v19, %v1454_v19 }
 0x37c   : > { %896 = vadd.xlane.f32.xlu0 %v895_v20 }
 0x37d   : > { %1315 = vmatmul.mubr.msk.bf16.vlgmr.msra.gmra.mrb[20].mxu0 %vm510_vm2, %v898_v21 }
 0x3ce   : > { %v608_v22 = vpop.f32.mrb[8].mxu0 }
 0x3cf   : > { %v1280_v23 = vpop.f32.mrb[9].mxu0 }
 0x3d0   : > { %v611_v24 = vpop.f32.mrb[10].mxu0 }
 0x3d1   : > { %v1281_v25 = vpop.f32.mrb[11].mxu0 }
 0x3f9   : > { %v676_v26 = vpop.xlane.xlu1 %675 }
 0x3fa   : > { %1455 = vrcp.f32 %v676_v26 }
 0x3fd   : > { %v565_v48 = vpop.xlane.xlu1 %564 }
 0x401   : > { %v787_v27 = vpop.xlane.xlu0 %786 }
 0x402   : > { %1457 = vrcp.f32 %v787_v27 }
 0x404   : > { %v1456_v29 = vpop.eup %1455 }
 0x409   : > { %v897_v34 = vpop.xlane.xlu0 %896 }
 0x40a   : > { %1459 = vrcp.f32 %v897_v34 }
 0x40b   : > { %1461 = vrcp.f32 %v565_v48 }
 0x40c   : > { %v1458_v37 = vpop.eup %1457 }
 0x414   : > { %v1460_v43 = vpop.eup %1459 }
 0x415   : > { %v1462_v49 = vpop.eup %1461 }
 0x416   : > { %v615_v52 = vmul.f32 %v1462_v49, %v608_v22 }
 0x440   : > { %v721_v30 = vpop.f32.mrb[12].mxu0 }
 0x441   : > { %v728_v31 = vmul.f32 %v1456_v29, %v721_v30  ;;  %v1292_v32 = vpop.f32.mrb[13].mxu0 }
 0x442   : > { %v724_v33 = vpop.f32.mrb[14].mxu0 }
 0x443   : > { %950 = vrot.lane.b32.xlu0 %v728_v31, %s1709_s8  ;;  %v1293_v35 = vpop.f32.mrb[15].mxu0 }
 0x448   : > { %v831_v38 = vpop.f32.mrb[16].mxu0 }
 0x449   : > { %v838_v39 = vmul.f32 %v1458_v37, %v831_v38  ;;  %v1304_v40 = vpop.f32.mrb[17].mxu0 }
 0x44a   : > { %v834_v41 = vpop.f32.mrb[18].mxu0 }
 0x44b   : > { %954 = vrot.lane.b32.xlu1 %v838_v39, %s1710_s7  ;;  %v1305_v42 = vpop.f32.mrb[19].mxu0 }
 0x450   : > { %v941_v44 = vpop.f32.mrb[20].mxu0 }
 0x451   : > { %v948_v45 = vmul.f32 %v1460_v43, %v941_v44  ;;  %v1316_v0 = vpop.f32.mrb[21].mxu0 }
 0x452   : > { %v944_v46 = vpop.f32.mrb[22].mxu0 }
 0x453   : > { %958 = vrot.lane.b32.xlu1 %v948_v45, %s1711_s29  ;;  %v1317_v47 = vpop.f32.mrb[23].mxu0 }
 0x4b5   : > { %v951_v50 = vpop.permute.xlu0 %950 }
 0x4b6   : > { %v961_v53 = vsel %vm510_vm2, %v615_v52, %v951_v50 }
 0x4bd   : > { %v955_v51 = vpop.permute.xlu1 %954 }
 0x4be   : > { %v963_v54 = vsel %vm962_vm4, %v961_v53, %v955_v51 }
 0x4c5   : > { %v959_v55 = vpop.permute.xlu1 %958 }
 0x4c6   : > { %v965_v56 = vsel %vm964_vm5, %v963_v54, %v959_v55 }
 0x4c7   : > { %v966_v57 = vpack.c.bf16 %v965_v56, %v965_v56 }
 0x4c9   : > { %1323 = vmatmul.mubr.msk.bf16.vlgmr.msra.gmra.mrb[20].mxu1 %vm358_vm1, %v966_v57 }
 0x59c   : > { %v1016_v58 = vpop.f32.mrb[20].mxu1 }
 0x59d   : > { %1026 = vst.msk [vmem:[%s318_s6] sm:$0xff] %vm358_vm1, %v1016_v58  ;;  %v1324_v59 = vpop.f32.mrb[21].mxu1 }
 0x59e   : > { %v1019_v60 = vpop.f32.mrb[22].mxu1 }
 0x59f   : > { %1618 = shalt.err (!%p1615_p8)
}
 0x5a0   : > { %s1619_s27 = scalar_lea.hbm %s2080_s17, 128  ;;  %s1623_s29 = scalar_lea.hbm %s2135_s5, 256 }
 0x5a1   : > { %p1620_p3 = scmp.ne.s32.totalorder %s2080_s17, %s1619_s27  ;;  %p1624_p13 = scmp.lt.u32.totalorder %s2080_s17, %s2135_s5 }
 0x5a2   : > { %p1625_p12 = scmp.lt.u32.totalorder %s1623_s29, %s1619_s27  ;;  %p1627_p2 = scmp.lt.u32.totalorder %s1619_s27, %s2080_s17 }
 0x5a3   : > { %p1621_p11 = pnand %p1620_p3, %p2152_p9 }
 0x5a4   : > { %p1626_p4 = por %p1625_p12, %p1624_p13 }
 0x5a5   : > { %p1622_p6 = pneg %p1621_p11 }
 0x5a6   : > { %p1628_p10 = por %p1627_p2, %p1626_p4 }
 0x5a8   : > { %p1629_p1 = pnand %p1628_p10, %p1622_p6 }
 0x5aa   : > { %1632 = shalt.err (!%p1629_p1)
}
 0x5ab   : > { %1344 = dma.vmem_to_hbm [thread:$0]  (%p2152_p9), %s2082_s24, 128, %s2080_s17, %s1035_s28   ;;  %v1325_v61 = vpop.f32.mrb[23].mxu1 }
 0x5ac PF: > { %s1061_s6 = sand.u32 1, %s1675_s18   ;;  %p2153_p0 = scmp.ne.s32.totalorder %s2148_s13, 0 }
 0x5ad   : > { %p2154_p7 = scmp.ge.s32.totalorder %s1695_s23, 2  ;;  %s1062_s16 = scalar_lea.sflag [#allocation4], %s1061_s6 }
 0x5af   : > { %p1364_p5 = pnand %p2154_p7, %p2153_p0 }
 0x5b1   : > { %1670 = dma.done.wait (!%p1364_p5), %s1062_s16, 128  }
 0x5b2   : > { %1672 = vsyncadd (!%p1364_p5), %s1062_s16, 4294967168  ;;  %s23_s23 = sadd.s32 1, %s1695_s23   ;;  %s2155_s18 = smov %s1679_s19 }
 0x5b3   : > { %p20_p8 = scmp.ge.s32.totalorder %s23_s23, 4   ;;  %s2156_s19 = smov %s1683_s20 }
 0x5b4   : > { %s2157_s20 = smov %s1931_s12  ;;  %s2158_s21 = smov %s1691_s22 }
 0x5b5   : > { %s2159_s22 = smov %s2161_s14  ;;  %22 = sbr.rel (!%p20_p8) target bundleno = 8 (0x8), region = 113 }
 0x5bc   :  { %1067 = vsyncpa [#allocation3], 1 }
 0x5bd   :  { %1069 = vsyncpa [#allocation3 + $0x1], 1 }
 0x5be   :  { %1070 = vsyncpa [#allocation6], 1 }
 0x5bf   :  { %1071 = vsyncpa [#allocation9], 1 }
 0x5c0   :  { %1072 = vsyncpa [#allocation4], 1 }
 0x5c1   :  { %1074 = vsyncpa [#allocation4 + $0x1], 1 }

</bundles_post_ra>
